<compile_context>
chip_gen: v7x
topology: tpu7x:2x2x1
jax: 0.10.0
libtpu: 0.0.40
codegen_flags: <defaults>
</compile_context>

<pallas_src>
import math
from functools import partial

import jax
import jax.numpy as jnp
from jax import lax
from jax.experimental import pallas as pl
from jax.experimental.pallas import tpu as pltpu

EPS = 1e-5
_SQRT_2_OVER_PI = math.sqrt(2.0 / math.pi)
_INV_SQRT2 = 1.0 / math.sqrt(2.0)


def _gelu(x):
    # tanh-approximation GELU: tanh rides the otherwise-idle EUP slot instead
    # of an erf VALU polynomial competing with the depthwise MAC/select work.
    # Numerical drift vs torch.nn.GELU()'s exact erf is ~3e-3 absolute.
    return 0.5 * x * (1.0 + jnp.tanh(_SQRT_2_OVER_PI * (x + 0.044715 * (x * x * x))))


def _erf_gelu(x):
    # exact GELU, used only by the plain-XLA reference (matches torch default)
    return 0.5 * x * (1.0 + lax.erf(x * _INV_SQRT2))


def _round_up(x, m):
    return (x + m - 1) // m * m


def _pad2(a, r, c):
    if r == 0 and c == 0:
        return a
    return jnp.pad(a, ((0, r), (0, c)))


def _bn_fold(gamma, beta, mean, var):
    scale = gamma / jnp.sqrt(var + EPS)
    shift = beta - mean * scale
    return scale, shift


# ---------------------------------------------------------------------------
# generation-dependent scoped-VMEM ceiling
# ---------------------------------------------------------------------------
_VMEM_LIMIT = None


def _vmem_limit_bytes():
    global _VMEM_LIMIT
    if _VMEM_LIMIT is None:
        try:
            cap = int(pltpu.get_tpu_info().vmem_capacity_bytes)
            # 3/4 of physical, capped at 100 MiB: ~96 MiB on v5e/v6e (128 MiB
            # physical), ~48 MiB on v7x (64 MiB physical).
            _VMEM_LIMIT = max(32 << 20, min((cap * 3) // 4, 100 << 20))
        except Exception:
            _VMEM_LIMIT = 48 << 20   # safe on every current generation
    return _VMEM_LIMIT


# ---------------------------------------------------------------------------
# pltpu.roll convention probe (tiny one-off kernel, run eagerly & cached)
# ---------------------------------------------------------------------------
_ROLL_SIGN = None


def _pltpu_roll_sign():
    """Returns +1 if pltpu.roll(x, s, ax)[i] == x[(i - s) % n] (jnp.roll
    convention), -1 otherwise.  Must run eagerly (it does: the wrappers below
    are called outside jit)."""
    global _ROLL_SIGN
    if _ROLL_SIGN is None:
        def probe(x_ref, o_ref):
            o_ref[...] = pltpu.roll(x_ref[...], 1, 0)

        x = jnp.broadcast_to(jnp.arange(8, dtype=jnp.float32)[:, None], (8, 128))
        y = pl.pallas_call(
            probe, out_shape=jax.ShapeDtypeStruct((8, 128), jnp.float32))(x)
        _ROLL_SIGN = 1 if int(y[0, 0]) == 7 else -1
    return _ROLL_SIGN


# ---------------------------------------------------------------------------
# Tiled matmul + bias (+ GELU + BN) kernel  -- used for the stem
# ---------------------------------------------------------------------------
def _matmul_bias_act_bn_kernel(x_ref, w_ref, b_ref, sc_ref, sh_ref,
                               o_ref, acc_ref, *, apply_gelu):
    @pl.when(pl.program_id(2) == 0)
    def _init():
        acc_ref[...] = jnp.zeros_like(acc_ref)

    # bf16 operands -> native MXU; accumulation stays f32 in the scratch.
    acc_ref[...] += jnp.dot(x_ref[...], w_ref[...],
                            preferred_element_type=jnp.float32)

    @pl.when(pl.program_id(2) == pl.num_programs(2) - 1)
    def _finalize():
        acc = acc_ref[...] + b_ref[...]          # (1, tn) broadcast
        if apply_gelu:
            acc = _gelu(acc)
        acc = acc * sc_ref[...] + sh_ref[...]
        o_ref[...] = acc.astype(o_ref.dtype)


def _fused_matmul(x, w, b, scale, shift, *, apply_gelu, out_dtype,
                  operand_dtype=jnp.bfloat16, tm=512, tn=256, tk=512):
    """(M,K) @ (K,N) + bias [-> GELU -> BN scale/shift], tiled & pipelined.

    Operands are fed to the MXU as bf16 (f32 accumulation in scratch).  A
    ragged K <= tk is kept as ONE full-dim block so no padded copy of the
    (M, K) matrix is materialized; M/N padding is skipped when already
    aligned.  Tiles are (8,128)-aligned and 256-friendly for the v6e/v7x MXU.
    """
    M, K = x.shape
    K2, N = w.shape
    assert K2 == K
    x = x.astype(operand_dtype)
    w = w.astype(operand_dtype)

    tm = min(tm, _round_up(M, 8))
    tn = min(tn, _round_up(N, 128))
    if K <= tk:
        tk = K                    # single ragged K block == full array dim
        Kp = K
    else:
        Kp = _round_up(K, tk)
    Mp = _round_up(M, tm)
    Np = _round_up(N, tn)

    xp = _pad2(x, Mp - M, Kp - K)
    wp = _pad2(w, Kp - K, Np - N)
    bp = _pad2(b.reshape(1, -1).astype(jnp.float32), 0, Np - N)
    scp = _pad2(scale.reshape(1, -1).astype(jnp.float32), 0, Np - N)
    shp = _pad2(shift.reshape(1, -1).astype(jnp.float32), 0, Np - N)

    grid = (Mp // tm, Np // tn, Kp // tk)
    out = pl.pallas_call(
        partial(_matmul_bias_act_bn_kernel, apply_gelu=apply_gelu),
        out_shape=jax.ShapeDtypeStruct((Mp, Np), out_dtype),
        grid_spec=pltpu.PrefetchScalarGridSpec(
            num_scalar_prefetch=0,
            grid=grid,
            in_specs=[
                pl.BlockSpec((tm, tk), lambda i, j, k: (i, k)),
                pl.BlockSpec((tk, tn), lambda i, j, k: (k, j)),
                # per-channel vectors are pinned to the N tile only
                pl.BlockSpec((1, tn), lambda i, j, k: (0, j)),
                pl.BlockSpec((1, tn), lambda i, j, k: (0, j)),
                pl.BlockSpec((1, tn), lambda i, j, k: (0, j)),
            ],
            out_specs=pl.BlockSpec((tm, tn), lambda i, j, k: (i, j)),
            scratch_shapes=[pltpu.VMEM((tm, tn), jnp.float32)],
        ),
        compiler_params=pltpu.CompilerParams(
            dimension_semantics=("parallel", "parallel", "arbitrary"),
            vmem_limit_bytes=_vmem_limit_bytes(),
        ),
    )(xp, wp, bp, scp, shp)
    return out[:M, :N]


# ---------------------------------------------------------------------------
# Fused ConvMixer block kernel: dwconv + GELU + BN + residual + pwconv
#                               + GELU + BN (+ global-avg-pool on last block)
# ---------------------------------------------------------------------------
def _block_kernel(x_ref, dww_ref, dwb_ref, dwsc_ref, dwsh_ref,
                  pww_ref, pwb_ref, pwsc_ref, pwsh_ref,
                  y_ref, *rest, ksize, roll_sign, emit_pool):
    if emit_pool:
        pool_ref, xpad_ref = rest
    else:
        (xpad_ref,) = rest

    H, W, C = x_ref.shape
    K = ksize
    p = (K - 1) // 2            # low-side 'same' padding (matches lax/torch)
    q = K - 1 - p               # high-side padding

    x = x_ref[...].astype(jnp.float32)            # read once; also the shortcut
    w = dww_ref[...].astype(jnp.float32)          # (K, K, C)

    # Zero the halo rows of the H-padded scratch once per image (leading-dim
    # slices: cheap, no retiling).  Rows [p, p+H) are overwritten per dx.
    if p:
        xpad_ref[0:p] = jnp.zeros((p, W, C), jnp.float32)
    if q:
        xpad_ref[p + H:] = jnp.zeros((q, W, C), jnp.float32)

    # column-validity iota on the W (sublane) axis; broadcasts over H and C
    wi = lax.broadcasted_iota(jnp.int32, (W, C), 0)

    acc = jnp.zeros((H, W, C), jnp.float32)
    for dx in range(K):                           # static unroll over W taps
        ow = dx - p
        if ow <= -W or ow >= W:
            continue                              # whole column range invalid
        # W shift via XLU rotate (overlaps with VPU MACs); wrapped columns are
        # zeroed by the mask so the rotation direction only matters for where
        # valid data lands (probed once in _pltpu_roll_sign).
        shift = ((-ow) * roll_sign) % W
        x_w = pltpu.roll(x, shift, 1) if shift else x
        if ow:
            valid_w = jnp.logical_and(wi + ow >= 0, wi + ow < W)
            x_w = jnp.where(valid_w, x_w, 0.0)
        # stage the W-shifted image in the H-padded scratch: every H tap below
        # becomes a plain leading-dim slice load (no concats, no zero buffers)
        xpad_ref[p:p + H] = x_w
        for dy in range(K):
            oh = dy - p
            if oh <= -H or oh >= H:
                continue
            tap = x_w if dy == p else xpad_ref[dy:dy + H]   # (H, W, C)
            acc = acc + tap * jnp.reshape(w[dy, dx], (1, 1, C))

    # depthwise epilogue: bias -> GELU -> BN -> residual (all in f32)
    acc = _gelu(acc + dwb_ref[...])
    acc = acc * dwsc_ref[...] + dwsh_ref[...]
    acc = acc + x

    # pointwise 1x1 conv as a bf16 MXU matmul with f32 accumulation
    # (the (H,W,C)<->(H*W,C) reshape is layout-free when W % 8 == 0)
    lhs = acc.reshape(H * W, C).astype(jnp.bfloat16)
    out = jnp.dot(lhs, pww_ref[...], preferred_element_type=jnp.float32)
    out = _gelu(out + pwb_ref[...])
    out = out * pwsc_ref[...] + pwsh_ref[...]

    if emit_pool:
        # fused global-average-pool (only the last block pays this reduction)
        pool_ref[...] = jnp.mean(out, axis=0, keepdims=True)

    y_ref[...] = out.reshape(H, W, C).astype(y_ref.dtype)


def _block_forward(x, dw_w, dw_b, dw_scale, dw_shift,
                   pw_w, pw_b, pw_scale, pw_shift, *, ksize, emit_pool):
    B, H, W, C = x.shape
    kern = partial(_block_kernel, ksize=ksize, roll_sign=_pltpu_roll_sign(),
                   emit_pool=emit_pool)

    in_specs = [
        pl.BlockSpec((None, H, W, C), lambda b: (b, 0, 0, 0)),
        pl.BlockSpec((ksize, ksize, C), lambda b: (0, 0, 0)),
        pl.BlockSpec((1, 1, C), lambda b: (0, 0, 0)),
        pl.BlockSpec((1, 1, C), lambda b: (0, 0, 0)),
        pl.BlockSpec((1, 1, C), lambda b: (0, 0, 0)),
        pl.BlockSpec((C, C), lambda b: (0, 0)),
        pl.BlockSpec((1, C), lambda b: (0, 0)),
        pl.BlockSpec((1, C), lambda b: (0, 0)),
        pl.BlockSpec((1, C), lambda b: (0, 0)),
    ]
    y_shape = jax.ShapeDtypeStruct((B, H, W, C), x.dtype)
    y_spec = pl.BlockSpec((None, H, W, C), lambda b: (b, 0, 0, 0))
    if emit_pool:
        out_shape = (y_shape, jax.ShapeDtypeStruct((B, 1, C), jnp.float32))
        out_specs = (y_spec, pl.BlockSpec((None, 1, C), lambda b: (b, 0, 0)))
    else:
        out_shape = y_shape
        out_specs = y_spec

    result = pl.pallas_call(
        kern,
        out_shape=out_shape,
        grid_spec=pltpu.PrefetchScalarGridSpec(
            num_scalar_prefetch=0,
            grid=(B,),
            in_specs=in_specs,
            out_specs=out_specs,
            # H-padded scratch: x + a zero halo of (K-1) rows
            scratch_shapes=[pltpu.VMEM((H + ksize - 1, W, C), jnp.float32)],
        ),
        compiler_params=pltpu.CompilerParams(
            dimension_semantics=("parallel",),
            vmem_limit_bytes=_vmem_limit_bytes(),
        ),
    )(x, dw_w, dw_b, dw_scale, dw_shift, pw_w, pw_b, pw_scale, pw_shift)

    if emit_pool:
        y, pooled = result
        return y, pooled[:, 0, :]
    return result, None


# ---------------------------------------------------------------------------
# parameters
# ---------------------------------------------------------------------------
def init_params(key, dim, depth, in_channels, kernel_size, patch_size, num_classes):
    ks = list(jax.random.split(key, 8 + depth * 8))
    it = iter(ks)

    def nrm(k, shape, s=0.1):
        return jax.random.normal(k, shape, jnp.float32) * s

    def bn(k):
        k1, k2, k3, k4 = jax.random.split(k, 4)
        gamma = 1.0 + 0.1 * jax.random.normal(k1, (dim,), jnp.float32)
        beta = 0.1 * jax.random.normal(k2, (dim,), jnp.float32)
        mean = 0.1 * jax.random.normal(k3, (dim,), jnp.float32)
        var = 0.5 + 0.1 * jnp.abs(jax.random.normal(k4, (dim,), jnp.float32))
        return gamma, beta, mean, var

    params = {
        "stem_w": nrm(next(it), (dim, in_channels, patch_size, patch_size)),
        "stem_b": nrm(next(it), (dim,)),
        "stem_bn": bn(next(it)),
        "blocks": [],
    }
    for _ in range(depth):
        params["blocks"].append({
            "dw_w": nrm(next(it), (dim, 1, kernel_size, kernel_size)),
            "dw_b": nrm(next(it), (dim,)),
            "dw_bn": bn(next(it)),
            "pw_w": nrm(next(it), (dim, dim, 1, 1)),
            "pw_b": nrm(next(it), (dim,)),
            "pw_bn": bn(next(it)),
        })
    params["fc_w"] = nrm(next(it), (num_classes, dim))
    params["fc_b"] = nrm(next(it), (num_classes,))
    return params


# ---------------------------------------------------------------------------
# forward
# ---------------------------------------------------------------------------
def convmixer_forward(params, x_nchw, *, patch_size, kernel_size,
                      act_dtype=jnp.float32):
    """ConvMixer forward.  MXU matmuls run on bf16 operands with f32
    accumulation regardless of act_dtype; act_dtype=jnp.bfloat16 additionally
    halves HBM traffic for the inter-block activations (recommended for
    bandwidth-bound configs, esp. v5e)."""
    B, Cin, Himg, Wimg = x_nchw.shape
    dim = params["stem_b"].shape[0]
    P = patch_size
    HP, WP = Himg // P, Wimg // P

    # ---- stem: patchify (glue) + fused tiled matmul/bias/GELU/BN kernel ----
    x = jnp.transpose(x_nchw, (0, 2, 3, 1))                     # NCHW -> NHWC
    patches = x.reshape(B, HP, P, WP, P, Cin)
    patches = jnp.transpose(patches, (0, 1, 3, 2, 4, 5))        # (B,HP,WP,P,P,Cin)
    patches = patches.reshape(B * HP * WP, P * P * Cin)
    stem_w = jnp.transpose(params["stem_w"], (2, 3, 1, 0)).reshape(P * P * Cin, dim)
    ssc, ssh = _bn_fold(*params["stem_bn"])
    out = _fused_matmul(patches, stem_w, params["stem_b"], ssc, ssh,
                        apply_gelu=True, out_dtype=act_dtype)
    x = out.reshape(B, HP, WP, dim)

    # ---- residual blocks: one fused Pallas kernel per block ----
    K = kernel_size
    pooled = None
    nblocks = len(params["blocks"])
    for idx, blk in enumerate(params["blocks"]):
        dw_w = jnp.transpose(blk["dw_w"], (2, 3, 1, 0)).reshape(K, K, dim)
        dsc, dsh = _bn_fold(*blk["dw_bn"])
        pw_w = blk["pw_w"].reshape(dim, dim).T.astype(jnp.bfloat16)  # MXU operand
        psc, psh = _bn_fold(*blk["pw_bn"])
        x, pooled = _block_forward(
            x, dw_w,
            blk["dw_b"].reshape(1, 1, dim),
            dsc.reshape(1, 1, dim), dsh.reshape(1, 1, dim),
            pw_w,
            blk["pw_b"].reshape(1, dim),
            psc.reshape(1, dim), psh.reshape(1, dim),
            ksize=K, emit_pool=(idx == nblocks - 1))

    # ---- head: global average pool (fused into the last block) + linear ----
    if pooled is None:   # depth == 0 fallback
        pooled = jnp.mean(x.astype(jnp.float32), axis=(1, 2))
    # M=B, N=num_classes are tiny -> plain XLA matmul, no kernel/pad overhead
    logits = pooled @ params["fc_w"].T + params["fc_b"]
    return logits


# ---------------------------------------------------------------------------
# pure-JAX (XLA) reference of the same module, for a correctness check
# (exact erf GELU, f32 everywhere -- tolerance absorbs the kernel's tanh-GELU
#  and bf16-MXU-operand drift)
# ---------------------------------------------------------------------------
def _reference_forward(params, x_nchw, *, patch_size, kernel_size):
    dn = ("NHWC", "HWIO", "NHWC")
    x = jnp.transpose(x_nchw, (0, 2, 3, 1))
    w = jnp.transpose(params["stem_w"], (2, 3, 1, 0))
    x = lax.conv_general_dilated(x, w, (patch_size, patch_size), "VALID",
                                 dimension_numbers=dn)
    sc, sh = _bn_fold(*params["stem_bn"])
    x = _erf_gelu(x + params["stem_b"]) * sc + sh
    for blk in params["blocks"]:
        shortcut = x
        wd = jnp.transpose(blk["dw_w"], (2, 3, 1, 0))            # (K,K,1,dim)
        y = lax.conv_general_dilated(x, wd, (1, 1), "SAME",
                                     dimension_numbers=dn,
                                     feature_group_count=x.shape[-1])
        sc, sh = _bn_fold(*blk["dw_bn"])
        y = _erf_gelu(y + blk["dw_b"]) * sc + sh
        x = y + shortcut
        wp = jnp.transpose(blk["pw_w"], (2, 3, 1, 0))            # (1,1,dim,dim)
        y = lax.conv_general_dilated(x, wp, (1, 1), "SAME",
                                     dimension_numbers=dn)
        sc, sh = _bn_fold(*blk["pw_bn"])
        x = _erf_gelu(y + blk["pw_b"]) * sc + sh
    pooled = jnp.mean(x, axis=(1, 2))
    return pooled @ params["fc_w"].T + params["fc_b"]


if __name__ == "__main__":
    # small shapes consistent with the module's forward
    # (W = IMG/PATCH = 8 keeps the in-kernel (H,W,C)<->(H*W,C) reshape free)
    B, CIN, IMG = 2, 3, 32
    DIM, DEPTH, KSIZE, PATCH, NUM_CLASSES = 128, 2, 3, 4, 16

    key = jax.random.PRNGKey(0)
    kx, kp = jax.random.split(key)
    x = jax.random.normal(kx, (B, CIN, IMG, IMG), jnp.float32)   # NCHW, like PyTorch
    params = init_params(kp, DIM, DEPTH, CIN, KSIZE, PATCH, NUM_CLASSES)

    logits = convmixer_forward(params, x, patch_size=PATCH, kernel_size=KSIZE)
    logits = jax.block_until_ready(logits)
    assert logits.shape == (B, NUM_CLASSES), logits.shape

    # correctness check against a plain-XLA implementation of the same module
    ref = jax.block_until_ready(
        _reference_forward(params, x, patch_size=PATCH, kernel_size=KSIZE))
    err = float(jnp.max(jnp.abs(logits - ref)))
    tol = 5e-2 * (1.0 + float(jnp.max(jnp.abs(ref))))
    assert err <= tol, f"mismatch vs reference: max|diff|={err} tol={tol}"

    print("KERNEL_OK")
</pallas_src>

<mosaic_0001>
module attributes {stable_mosaic.version = 11 : i64} {
  func.func @_matmul_bias_act_bn_kernel(%arg0: i32, %arg1: i32, %arg2: i32, %arg3: memref<128x48xbf16, #tpu.memory_space<vmem>>, %arg4: memref<48x128xbf16, #tpu.memory_space<vmem>>, %arg5: memref<1x128xf32, #tpu.memory_space<vmem>>, %arg6: memref<1x128xf32, #tpu.memory_space<vmem>>, %arg7: memref<1x128xf32, #tpu.memory_space<vmem>>, %arg8: memref<128x128xf32, #tpu.memory_space<vmem>>, %arg9: memref<128x128xf32, #tpu.memory_space<vmem>>) attributes {dimension_semantics = [#tpu.dimension_semantics<parallel>, #tpu.dimension_semantics<parallel>, #tpu.dimension_semantics<arbitrary>], iteration_bounds = array<i64: 1, 1, 1>, scalar_prefetch = 0 : i64, scratch_operands = 1 : i64, tpu.core_type = #tpu.core_type<tc>, window_params = [{transform_indices = @transform_0, window_bounds = array<i64: 128, 48>}, {transform_indices = @transform_1, window_bounds = array<i64: 48, 128>}, {transform_indices = @transform_2, window_bounds = array<i64: 1, 128>}, {transform_indices = @transform_3, window_bounds = array<i64: 1, 128>}, {transform_indices = @transform_4, window_bounds = array<i64: 1, 128>}, {transform_indices = @transform_5, window_bounds = array<i64: 128, 128>}]} {
    %c0_i32 = arith.constant 0 : i32
    %0 = arith.cmpi eq, %arg2, %c0_i32 : i32
    %1 = arith.extui %0 : i1 to i32
    %c0_i32_0 = arith.constant 0 : i32
    %2 = arith.cmpi ne, %1, %c0_i32_0 : i32
    scf.if %2 {
      %cst_10 = arith.constant 0.000000e+00 : f32
      %12 = vector.broadcast %cst_10 : f32 to vector<128x128xf32>
      %c0_11 = arith.constant 0 : index
      %c0_12 = arith.constant 0 : index
      %13 = vector.load %arg9[%c0_11, %c0_12] : memref<128x128xf32, #tpu.memory_space<vmem>>, vector<128x128xf32>
      tpu.vector_store %arg9[%c0_11, %c0_12], %12 {strides = array<i32>} : memref<128x128xf32, #tpu.memory_space<vmem>>, vector<128x128xf32>,
    } else {
    }
    %c0 = arith.constant 0 : index
    %c0_1 = arith.constant 0 : index
    %3 = vector.load %arg9[%c0, %c0_1] : memref<128x128xf32, #tpu.memory_space<vmem>>, vector<128x128xf32>
    %c0_2 = arith.constant 0 : index
    %c0_3 = arith.constant 0 : index
    %4 = vector.load %arg3[%c0_2, %c0_3] : memref<128x48xbf16, #tpu.memory_space<vmem>>, vector<128x48xbf16>
    %c0_4 = arith.constant 0 : index
    %c0_5 = arith.constant 0 : index
    %5 = vector.load %arg4[%c0_4, %c0_5] : memref<48x128xbf16, #tpu.memory_space<vmem>>, vector<48x128xbf16>
    %cst = arith.constant dense<0.000000e+00> : vector<128x128xf32>
    %6 = tpu.matmul %4, %5, %cst {dimension_numbers = #tpu.dot_dimension_numbers<[1], [0], [0], [1], [0, 0, 1, 1], [], []>} : vector<128x48xbf16>, vector<48x128xbf16>, vector<128x128xf32> -> vector<128x128xf32>
    %7 = arith.addf %3, %6 : vector<128x128xf32>
    %c0_6 = arith.constant 0 : index
    %c0_7 = arith.constant 0 : index
    %8 = vector.load %arg9[%c0_6, %c0_7] : memref<128x128xf32, #tpu.memory_space<vmem>>, vector<128x128xf32>
    tpu.vector_store %arg9[%c0_6, %c0_7], %7 {strides = array<i32>} : memref<128x128xf32, #tpu.memory_space<vmem>>, vector<128x128xf32>,
    %c0_i32_8 = arith.constant 0 : i32
    %9 = arith.cmpi eq, %arg2, %c0_i32_8 : i32
    %10 = arith.extui %9 : i1 to i32
    %c0_i32_9 = arith.constant 0 : i32
    %11 = arith.cmpi ne, %10, %c0_i32_9 : i32
    scf.if %11 {
      %c0_10 = arith.constant 0 : index
      %c0_11 = arith.constant 0 : index
      %12 = vector.load %arg9[%c0_10, %c0_11] : memref<128x128xf32, #tpu.memory_space<vmem>>, vector<128x128xf32>
      %c0_12 = arith.constant 0 : index
      %c0_13 = arith.constant 0 : index
      %13 = vector.load %arg5[%c0_12, %c0_13] : memref<1x128xf32, #tpu.memory_space<vmem>>, vector<1x128xf32>
      %14 = vector.broadcast %13 : vector<1x128xf32> to vector<128x128xf32>
      %15 = arith.addf %12, %14 : vector<128x128xf32>
      %cst_14 = arith.constant 5.000000e-01 : f32
      %16 = vector.broadcast %cst_14 : f32 to vector<128x128xf32>
      %17 = arith.mulf %16, %15 : vector<128x128xf32>
      %18 = arith.mulf %15, %15 : vector<128x128xf32>
      %19 = arith.mulf %18, %15 : vector<128x128xf32>
      %cst_15 = arith.constant 4.471500e-02 : f32
      %20 = vector.broadcast %cst_15 : f32 to vector<128x128xf32>
      %21 = arith.mulf %20, %19 : vector<128x128xf32>
      %22 = arith.addf %15, %21 : vector<128x128xf32>
      %cst_16 = arith.constant 0.797884583 : f32
      %23 = vector.broadcast %cst_16 : f32 to vector<128x128xf32>
      %24 = arith.mulf %23, %22 : vector<128x128xf32>
      %25 = math.tanh %24 : vector<128x128xf32>
      %cst_17 = arith.constant 1.000000e+00 : f32
      %26 = vector.broadcast %cst_17 : f32 to vector<128x128xf32>
      %27 = arith.addf %26, %25 : vector<128x128xf32>
      %28 = arith.mulf %17, %27 : vector<128x128xf32>
      %c0_18 = arith.constant 0 : index
      %c0_19 = arith.constant 0 : index
      %29 = vector.load %arg6[%c0_18, %c0_19] : memref<1x128xf32, #tpu.memory_space<vmem>>, vector<1x128xf32>
      %30 = vector.broadcast %29 : vector<1x128xf32> to vector<128x128xf32>
      %31 = arith.mulf %28, %30 : vector<128x128xf32>
      %c0_20 = arith.constant 0 : index
      %c0_21 = arith.constant 0 : index
      %32 = vector.load %arg7[%c0_20, %c0_21] : memref<1x128xf32, #tpu.memory_space<vmem>>, vector<1x128xf32>
      %33 = vector.broadcast %32 : vector<1x128xf32> to vector<128x128xf32>
      %34 = arith.addf %31, %33 : vector<128x128xf32>
      %c0_22 = arith.constant 0 : index
      %c0_23 = arith.constant 0 : index
      %35 = vector.load %arg8[%c0_22, %c0_23] : memref<128x128xf32, #tpu.memory_space<vmem>>, vector<128x128xf32>
      tpu.vector_store %arg8[%c0_22, %c0_23], %34 {strides = array<i32>} : memref<128x128xf32, #tpu.memory_space<vmem>>, vector<128x128xf32>,
    } else {
    }
    return
  }
  func.func @transform_0(%arg0: i32, %arg1: i32, %arg2: i32) -> (i32, i32) {
    %c0_i32 = arith.constant 0 : i32
    return %arg0, %arg2 : i32, i32
  }
  func.func @transform_1(%arg0: i32, %arg1: i32, %arg2: i32) -> (i32, i32) {
    %c0_i32 = arith.constant 0 : i32
    return %arg2, %arg1 : i32, i32
  }
  func.func @transform_2(%arg0: i32, %arg1: i32, %arg2: i32) -> (i32, i32) {
    %c0_i32 = arith.constant 0 : i32
    %c0_i32_0 = arith.constant 0 : i32
    return %c0_i32, %arg1 : i32, i32
  }
  func.func @transform_3(%arg0: i32, %arg1: i32, %arg2: i32) -> (i32, i32) {
    %c0_i32 = arith.constant 0 : i32
    %c0_i32_0 = arith.constant 0 : i32
    return %c0_i32, %arg1 : i32, i32
  }
  func.func @transform_4(%arg0: i32, %arg1: i32, %arg2: i32) -> (i32, i32) {
    %c0_i32 = arith.constant 0 : i32
    %c0_i32_0 = arith.constant 0 : i32
    return %c0_i32, %arg1 : i32, i32
  }
  func.func @transform_5(%arg0: i32, %arg1: i32, %arg2: i32) -> (i32, i32) {
    %c0_i32 = arith.constant 0 : i32
    return %arg0, %arg1 : i32, i32
  }
}

</mosaic_0001>

<bundles_post_ra>
// kernel: tpu_custom_call.1
= control target key start
LH: loop header
LB: loop body
LE: loop exit
PB: predicated region body
PF: predicated region fallthrough
CT: control target
= control target key end

     0   :  { %vm138_vm0 = vcmask 392192   ;;  %s936_s0 = inlined_call_operand.vmem [shape: bf16[128,48], index: 0, kind: input, shape index: {}]   ;;  %s937_s1 = inlined_call_operand.vmem [shape: bf16[48,128], index: 1, kind: input, shape index: {}]   ;;  %s938_s2 = inlined_call_operand.vmem [shape: f32[1,128], index: 2, kind: input, shape index: {}]   ;;  %s939_s3 = inlined_call_operand.vmem [shape: f32[1,128], index: 3, kind: input, shape index: {}]   ;;  %s940_s4 = inlined_call_operand.vmem [shape: f32[1,128], index: 4, kind: input, shape index: {}]   ;;  %s941_s5 = inlined_call_operand.hbm [shape: f32[128,128], index: 5, kind: output, shape index: {}]  }
   0x1   :  { %v620_v0 = vld [vmem:[%s937_s1] sm:$0xff]   ;;  %v621_v1 = vld [vmem:[%s937_s1 + $0x8] sm:$0xff]   ;;  %v622_v2 = vld [vmem:[%s937_s1 + $0x10] sm:$0xff]  }
   0x2   :  { %589 = vmatprep.subr.bf16.mxu0 %v620_v0  ;;  %611 = vmatprep.subr.bf16.mxu1 %v620_v0  ;;  %v623_v3 = vld [vmem:[%s936_s0] sm:$0xff]   ;;  %v625_v5 = vld [vmem:[%s936_s0 + $0x8] sm:$0xff]   ;;  %v627_v7 = vld [vmem:[%s936_s0 + $0x10] sm:$0xff]  }
   0x3   :  { %590 = vmatpush3.bf16.msra.mxu0 %v620_v0  ;;  %614 = vmatpush3.bf16.msra.mxu1 %v620_v0  ;;  %v624_v4 = vld [vmem:[%s936_s0 + $0x20] sm:$0xff]   ;;  %v626_v6 = vld [vmem:[%s936_s0 + $0x28] sm:$0xff]   ;;  %v628_v8 = vld [vmem:[%s936_s0 + $0x30] sm:$0xff]  }
   0x4   :  { %591 = vmatprep.subr.bf16.mxu0 %v621_v1  ;;  %612 = vmatprep.subr.bf16.mxu1 %v621_v1 }
   0x5   :  { %595 = vmatprep.mubr.msk.bf16.mxu0 %vm138_vm0, %v623_v3  ;;  %603 = vmatprep.mubr.msk.bf16.mxu1 %vm138_vm0, %v624_v4 }
   0x7   :  { %592 = vmatpush3.bf16.msra.mxu0 %v621_v1  ;;  %615 = vmatpush3.bf16.msra.mxu1 %v621_v1 }
   0x8   :  { %593 = vmatprep.subr.bf16.mxu0 %v622_v2  ;;  %613 = vmatprep.subr.bf16.mxu1 %v622_v2 }
   0xb   :  { %594 = vmatpush3.bf16.msra.mxu0 %v622_v2  ;;  %616 = vmatpush3.bf16.msra.mxu1 %v622_v2 }
   0xc   :  { %10 = vsyncpa [#allocation4], 0  ;;  %v629_v9 = vld [vmem:[%s936_s0 + $0x18] sm:$0xff]   ;;  %v764_v11 = vld [vmem:[%s938_s2] ss:$0 sm:$0xff] }
   0xd   :  { %v630_v10 = vld [vmem:[%s936_s0 + $0x38] sm:$0xff]  }
   0xe   :  { %596 = vmatmul.mubr.msk.bf16.vlgmr.msra.gmra.mrb[0].mxu0 %vm138_vm0, %v625_v5  ;;  %604 = vmatmul.mubr.msk.bf16.vlgmr.msra.gmra.mrb[0].mxu1 %vm138_vm0, %v626_v6 }
   0xf   :  { %599 = vmatprep.mubr.msk.bf16.mxu0 %vm138_vm0, %v627_v7  ;;  %607 = vmatprep.mubr.msk.bf16.mxu1 %vm138_vm0, %v628_v8 }
  0x16   :  { %600 = vmatmul.mubr.msk.bf16.gmra.mrb[4].mxu0 %vm138_vm0, %v629_v9  ;;  %608 = vmatmul.mubr.msk.bf16.gmra.mrb[4].mxu1 %vm138_vm0, %v630_v10 }
  0xe1   :  { %v597_v12 = vpop.f32.mrb[0].mxu0  ;;  %v605_v13 = vpop.f32.mrb[0].mxu1 }
  0xe2   :  { %v320_v14 = vadd.f32 %v597_v12, %v764_v11  ;;  %v328_v15 = vadd.f32 %v605_v13, %v764_v11  ;;  %v197_v16 = vpop.f32.mrb[1].mxu0  ;;  %v229_v17 = vpop.f32.mrb[1].mxu1 }
  0xe3   :  { %v318_v18 = vadd.f32 %v764_v11, %v197_v16  ;;  %v770_v19 = vadd.f32 %v764_v11, %v229_v17  ;;  %v598_v20 = vpop.f32.mrb[2].mxu0  ;;  %v606_v21 = vpop.f32.mrb[2].mxu1 }
  0xe4   :  { %v352_v22 = vmul.f32 %v320_v14, %v320_v14  ;;  %v360_v23 = vmul.f32 %v328_v15, %v328_v15  ;;  %v200_v24 = vpop.f32.mrb[3].mxu0  ;;  %v232_v25 = vpop.f32.mrb[3].mxu1  ;;  %v775_v30 = vadd.f32 %v598_v20, %v764_v11  ;;  %v778_v31 = vadd.f32 %v606_v21, %v764_v11 }
  0xe5   :  { %v350_v26 = vmul.f32 %v318_v18, %v318_v18  ;;  %v358_v27 = vmul.f32 %v770_v19, %v770_v19  ;;  %v782_v34 = vadd.f32 %v764_v11, %v200_v24  ;;  %v787_v38 = vadd.f32 %v764_v11, %v232_v25 }
  0xe6   :  { %v368_v28 = vmul.f32 %v352_v22, %v320_v14  ;;  %v376_v29 = vmul.f32 %v360_v23, %v328_v15  ;;  %v353_v37 = vmul.f32 %v775_v30, %v775_v30  ;;  %v361_v41 = vmul.f32 %v778_v31, %v778_v31 }
  0xe7   :  { %v366_v32 = vmul.f32 %v350_v26, %v318_v18  ;;  %v374_v33 = vmul.f32 %v358_v27, %v770_v19  ;;  %v791_v43 = vmul.f32 0.5, %v320_v14  ;;  %v351_v52 = vmul.f32 %v782_v34, %v782_v34 }
  0xe8   :  { %v384_v35 = vmul.f32 0.044715, %v368_v28  ;;  %v392_v36 = vmul.f32 0.044715, %v376_v29  ;;  %v369_v46 = vmul.f32 %v353_v37, %v775_v30  ;;  %v377_v51 = vmul.f32 %v361_v41, %v778_v31 }
  0xe9   :  { %v382_v39 = vmul.f32 0.044715, %v366_v32  ;;  %v390_v40 = vmul.f32 0.044715, %v374_v33  ;;  %v601_v42 = vpop.f32.mrb[4].mxu0  ;;  %v609_v47 = vpop.f32.mrb[4].mxu1  ;;  %v359_v58 = vmul.f32 %v787_v38, %v787_v38  ;;  %v367_v62 = vmul.f32 %v351_v52, %v782_v34 }
  0xea   :  { %v400_v44 = vadd.f32 %v384_v35, %v320_v14  ;;  %v408_v45 = vadd.f32 %v392_v36, %v328_v15  ;;  %v213_v48 = vpop.f32.mrb[5].mxu0  ;;  %v245_v53 = vpop.f32.mrb[5].mxu1  ;;  %v385_v57 = vmul.f32 0.044715, %v369_v46  ;;  %v393_v61 = vmul.f32 0.044715, %v377_v51 }
  0xeb   :  { %v398_v49 = vadd.f32 %v382_v39, %v318_v18  ;;  %v406_v50 = vadd.f32 %v390_v40, %v770_v19  ;;  %v602_v54 = vpop.f32.mrb[6].mxu0  ;;  %v801_v63 = vmul.f32 0.5, %v328_v15  ;;  %v375_v1 = vmul.f32 %v359_v58, %v787_v38  ;;  %v610_v2 = vpop.f32.mrb[6].mxu1  ;;  %v863_v58 = vld [vmem:[%s940_s4] ss:$0 sm:$0xff]  ;;  %s687_s4 = smov [#allocation3]  }
  0xec   :  { %v416_v55 = vmul.f32 0.7978846, %v400_v44  ;;  %v424_v56 = vmul.f32 0.7978846, %v408_v45  ;;  %v401_v0 = vadd.f32 %v385_v57, %v775_v30  ;;  %v216_v3 = vpop.f32.mrb[7].mxu0  ;;  %v409_v4 = vadd.f32 %v393_v61, %v778_v31  ;;  %v809_v7 = vpop.f32.mrb[7].mxu1 }
  0xed   :  { %v414_v59 = vmul.f32 0.7978846, %v398_v49  ;;  %v422_v60 = vmul.f32 0.7978846, %v406_v50  ;;  %v383_v5 = vmul.f32 0.044715, %v367_v62  ;;  %v807_v6 = vadd.f32 %v601_v42, %v764_v11 }
  0xee   :  { %631 = vtanh.f32 %v416_v55  ;;  %v417_v8 = vmul.f32 0.7978846, %v401_v0  ;;  %v391_v9 = vmul.f32 0.044715, %v375_v1  ;;  %v812_v10 = vadd.f32 %v609_v47, %v764_v11  ;;  %s545_s17 = sshll.u32 %s687_s4, 4  ;;  %s546_s17 = int_to_ptr.vmem [resolvable:$true] %s545_s17 }
  0xef   :  { %633 = vtanh.f32 %v424_v56  ;;  %v334_v12 = vmul.f32 0.5, %v318_v18  ;;  %v425_v13 = vmul.f32 0.7978846, %v409_v4  ;;  %v399_v14 = vadd.f32 %v383_v5, %v782_v34  ;;  %s663_s18 = scalar_lea.vmem %s546_s17, 2048  ;;  %p668_p1 = scmp.lt.s32.totalorder %s546_s17, %s546_s17 }
  0xf0   :  { %635 = vtanh.f32 %v414_v59  ;;  %v342_v15 = vmul.f32 0.5, %v770_v19  ;;  %v407_v16 = vadd.f32 %v391_v9, %v787_v38  ;;  %v356_v17 = vmul.f32 %v807_v6, %v807_v6  ;;  %p664_p0 = scmp.ne.s32.totalorder %s546_s17, %s663_s18  ;;  %p669_p2 = scmp.lt.s32.totalorder %s663_s18, %s663_s18 }
  0xf1   :  { %637 = vtanh.f32 %v422_v60  ;;  %v415_v20 = vmul.f32 0.7978846, %v399_v14  ;;  %v364_v21 = vmul.f32 %v812_v10, %v812_v10  ;;  %v822_v22 = vadd.f32 %v764_v11, %v213_v48 }
  0xf2   :  { %639 = vtanh.f32 %v417_v8  ;;  %v423_v18 = vmul.f32 0.7978846, %v407_v16  ;;  %v372_v23 = vmul.f32 %v356_v17, %v807_v6  ;;  %v826_v24 = vadd.f32 %v764_v11, %v245_v53  ;;  %p670_p3 = por %p669_p2, %p668_p1 }
  0xf3   :  { %641 = vtanh.f32 %v425_v13  ;;  %v829_v19 = vadd.f32 %v602_v54, %v764_v11  ;;  %v337_v25 = vmul.f32 0.5, %v775_v30  ;;  %v380_v26 = vmul.f32 %v364_v21, %v812_v10 }
  0xf4   :  { %643 = vtanh.f32 %v415_v20  ;;  %v354_v27 = vmul.f32 %v822_v22, %v822_v22  ;;  %v345_v28 = vmul.f32 0.5, %v778_v31  ;;  %v388_v29 = vmul.f32 0.044715, %v372_v23  ;;  %p671_p4 = pnand %p670_p3, %p664_p0 }
  0xf5   :  { %645 = vtanh.f32 %v423_v18  ;;  %v362_v32 = vmul.f32 %v826_v24, %v826_v24  ;;  %v335_v33 = vmul.f32 0.5, %v782_v34  ;;  %v396_v35 = vmul.f32 0.044715, %v380_v26  ;;  %v851_v34 = vld [vmem:[%s939_s3] ss:$0 sm:$0xff] }
  0xf6   :  { %v370_v36 = vmul.f32 %v354_v27, %v822_v22  ;;  %v357_v30 = vmul.f32 %v829_v19, %v829_v19  ;;  %v343_v39 = vmul.f32 0.5, %v787_v38  ;;  %v404_v40 = vadd.f32 %v388_v29, %v807_v6 }
  0xf7   :  { %v378_v31 = vmul.f32 %v362_v32, %v826_v24  ;;  %v846_v41 = vadd.f32 %v610_v2, %v764_v11  ;;  %v412_v45 = vadd.f32 %v396_v35, %v812_v10  ;;  %v855_v47 = vadd.f32 %v764_v11, %v216_v3 }
  0xf8   :  { %v632_v37 = vpop.eup %631  ;;  %v386_v46 = vmul.f32 0.044715, %v370_v36  ;;  %v420_v49 = vmul.f32 0.7978846, %v404_v40  ;;  %v373_v51 = vmul.f32 %v357_v30, %v829_v19 }
  0xf9   :  { %v634_v42 = vpop.eup %633  ;;  %v448_v44 = vadd.f32 1.0, %v632_v37  ;;  %v394_v50 = vmul.f32 0.044715, %v378_v31  ;;  %v428_v55 = vmul.f32 0.7978846, %v412_v45  ;;  %v365_v35 = vmul.f32 %v846_v41, %v846_v41 }
  0xfa   :  { %v636_v38 = vpop.eup %635  ;;  %v456_v48 = vadd.f32 1.0, %v634_v42  ;;  %v402_v56 = vadd.f32 %v386_v46, %v822_v22  ;;  %647 = vtanh.f32 %v420_v49  ;;  %v355_v37 = vmul.f32 %v855_v47, %v855_v47 }
  0xfb   :  { %v638_v52 = vpop.eup %637  ;;  %v464_v53 = vmul.f32 %v448_v44, %v791_v43  ;;  %v446_v54 = vadd.f32 1.0, %v636_v38  ;;  %v410_v61 = vadd.f32 %v394_v50, %v826_v24  ;;  %649 = vtanh.f32 %v428_v55 }
  0xfc   :  { %v640_v57 = vpop.eup %639  ;;  %v472_v59 = vmul.f32 %v456_v48, %v801_v63  ;;  %v454_v60 = vadd.f32 1.0, %v638_v52  ;;  %v418_v5 = vmul.f32 0.7978846, %v402_v56  ;;  %v381_v31 = vmul.f32 %v365_v35, %v846_v41 }
  0xfd   :  { %v642_v62 = vpop.eup %641  ;;  %v487_v0 = vmul.f32 %v851_v34, %v464_v53  ;;  %v462_v43 = vmul.f32 %v446_v54, %v334_v12  ;;  %v449_v1 = vadd.f32 1.0, %v640_v57  ;;  %v426_v14 = vmul.f32 0.7978846, %v410_v61 }
  0xfe   :  { %v495_v2 = vmul.f32 %v851_v34, %v472_v59  ;;  %v470_v3 = vmul.f32 %v454_v60, %v342_v15  ;;  %v457_v4 = vadd.f32 1.0, %v642_v62  ;;  %v644_v8 = vpop.eup %643  ;;  %651 = vtanh.f32 %v418_v5 }
  0xff   :  { %v510_v9 = vadd.f32 %v863_v58, %v487_v0  ;;  %v485_v63 = vmul.f32 %v851_v34, %v462_v43  ;;  %v465_v13 = vmul.f32 %v449_v1, %v337_v25  ;;  %v646_v16 = vpop.eup %645  ;;  %v447_v21 = vadd.f32 1.0, %v644_v8 }
 0x100   :  { %v518_v17 = vadd.f32 %v863_v58, %v495_v2  ;;  %v493_v20 = vmul.f32 %v851_v34, %v470_v3  ;;  %v473_v12 = vmul.f32 %v457_v4, %v345_v28  ;;  %v455_v23 = vadd.f32 1.0, %v646_v16 }
 0x101   :  { %526 = vst [vmem:[#allocation3 + $0x10] sm:$0xff] %v510_v9  ;;  %v508_v18 = vadd.f32 %v863_v58, %v485_v63  ;;  %v488_v15 = vmul.f32 %v851_v34, %v465_v13  ;;  %v463_v27 = vmul.f32 %v447_v21, %v335_v33  ;;  %653 = vtanh.f32 %v426_v14 }
 0x102   :  { %534 = vst [vmem:[#allocation3 + $0x50] sm:$0xff] %v518_v17  ;;  %v516_v26 = vadd.f32 %v863_v58, %v493_v20  ;;  %v496_v25 = vmul.f32 %v851_v34, %v473_v12  ;;  %v471_v32 = vmul.f32 %v455_v23, %v343_v39  ;;  %v389_v28 = vmul.f32 0.044715, %v373_v51 }
 0x103   :  { %524 = vst [vmem:[#allocation3] sm:$0xff] %v508_v18  ;;  %v511_v29 = vadd.f32 %v863_v58, %v488_v15  ;;  %v486_v30 = vmul.f32 %v851_v34, %v463_v27  ;;  %v889_v39 = vadd.f32 %v764_v11, %v809_v7  ;;  %v340_v45 = vmul.f32 0.5, %v807_v6 }
 0x104   :  { %532 = vst [vmem:[#allocation3 + $0x40] sm:$0xff] %v516_v26  ;;  %v519_v36 = vadd.f32 %v863_v58, %v496_v25  ;;  %v494_v33 = vmul.f32 %v851_v34, %v471_v32  ;;  %v405_v40 = vadd.f32 %v389_v28, %v829_v19  ;;  %v648_v42 = vpop.eup %647  ;;  %v371_v46 = vmul.f32 %v355_v37, %v855_v47 }
 0x105   :  { %527 = vst [vmem:[#allocation3 + $0x18] sm:$0xff] %v511_v29  ;;  %v509_v44 = vadd.f32 %v863_v58, %v486_v30  ;;  %v650_v38 = vpop.eup %649  ;;  %v452_v49 = vadd.f32 1.0, %v648_v42  ;;  %v397_v51 = vmul.f32 0.044715, %v381_v31  ;;  %v348_v52 = vmul.f32 0.5, %v812_v10 }
 0x106   :  { %535 = vst [vmem:[#allocation3 + $0x58] sm:$0xff] %v519_v36  ;;  %v517_v48 = vadd.f32 %v863_v58, %v494_v33  ;;  %v421_v50 = vmul.f32 0.7978846, %v405_v40  ;;  %v460_v53 = vadd.f32 1.0, %v650_v38  ;;  %v387_v11 = vmul.f32 0.044715, %v371_v46 }
 0x107   :  { %525 = vst [vmem:[#allocation3 + $0x8] sm:$0xff] %v509_v44  ;;  %v363_v7 = vmul.f32 %v889_v39, %v889_v39  ;;  %v468_v54 = vmul.f32 %v452_v49, %v340_v45  ;;  %v413_v6 = vadd.f32 %v397_v51, %v846_v41  ;;  %v338_v10 = vmul.f32 0.5, %v822_v22 }
 0x108   :  { %533 = vst [vmem:[#allocation3 + $0x48] sm:$0xff] %v517_v48  ;;  %655 = vtanh.f32 %v421_v50  ;;  %v476_v55 = vmul.f32 %v460_v53, %v348_v52  ;;  %v403_v56 = vadd.f32 %v387_v11, %v855_v47  ;;  %v652_v59 = vpop.eup %651  ;;  %v346_v4 = vmul.f32 0.5, %v826_v24 }
 0x109   :  { %v379_v57 = vmul.f32 %v363_v7, %v889_v39  ;;  %v491_v60 = vmul.f32 %v851_v34, %v468_v54  ;;  %v429_v61 = vmul.f32 0.7978846, %v413_v6  ;;  %v450_v43 = vadd.f32 1.0, %v652_v59 }
 0x10a   :  { %v499_v0 = vmul.f32 %v851_v34, %v476_v55  ;;  %v419_v1 = vmul.f32 0.7978846, %v403_v56  ;;  %v341_v12 = vmul.f32 0.5, %v829_v19  ;;  %v349_v25 = vmul.f32 0.5, %v846_v41 }
 0x10b   :  { %v654_v62 = vpop.eup %653  ;;  %v395_v2 = vmul.f32 0.044715, %v379_v57  ;;  %v514_v3 = vadd.f32 %v863_v58, %v491_v60  ;;  %657 = vtanh.f32 %v429_v61  ;;  %v466_v9 = vmul.f32 %v450_v43, %v338_v10 }
 0x10c   :  { %v458_v5 = vadd.f32 1.0, %v654_v62  ;;  %v522_v8 = vadd.f32 %v863_v58, %v499_v0  ;;  %659 = vtanh.f32 %v419_v1  ;;  %v339_v29 = vmul.f32 0.5, %v855_v47 }
 0x10d   :  { %v411_v63 = vadd.f32 %v395_v2, %v889_v39  ;;  %530 = vst [vmem:[#allocation3 + $0x30] sm:$0xff] %v514_v3  ;;  %v489_v13 = vmul.f32 %v851_v34, %v466_v9  ;;  %v347_v33 = vmul.f32 0.5, %v889_v39 }
 0x10e   :  { %v474_v22 = vmul.f32 %v458_v5, %v346_v4  ;;  %538 = vst [vmem:[#allocation3 + $0x70] sm:$0xff] %v522_v8 }
 0x10f   :  { %v427_v14 = vmul.f32 0.7978846, %v411_v63  ;;  %v512_v17 = vadd.f32 %v863_v58, %v489_v13 }
 0x110   :  { %v497_v16 = vmul.f32 %v851_v34, %v474_v22 }
 0x111   :  { %661 = vtanh.f32 %v427_v14  ;;  %528 = vst [vmem:[#allocation3 + $0x20] sm:$0xff] %v512_v17 }
 0x112   :  { %v656_v24 = vpop.eup %655  ;;  %v520_v20 = vadd.f32 %v863_v58, %v497_v16 }
 0x113   :  { %v453_v21 = vadd.f32 1.0, %v656_v24 }
 0x114   :  { %536 = vst [vmem:[#allocation3 + $0x60] sm:$0xff] %v520_v20 }
 0x115   :  { %v469_v18 = vmul.f32 %v453_v21, %v341_v12  ;;  %v658_v15 = vpop.eup %657 }
 0x116   :  { %v660_v23 = vpop.eup %659  ;;  %v461_v27 = vadd.f32 1.0, %v658_v15 }
 0x117   :  { %v492_v26 = vmul.f32 %v851_v34, %v469_v18  ;;  %v451_v32 = vadd.f32 1.0, %v660_v23 }
 0x118   :  { %v477_v35 = vmul.f32 %v461_v27, %v349_v25 }
 0x119   :  { %v515_v28 = vadd.f32 %v863_v58, %v492_v26  ;;  %v467_v36 = vmul.f32 %v451_v32, %v339_v29 }
 0x11a   :  { %v500_v19 = vmul.f32 %v851_v34, %v477_v35 }
 0x11b   :  { %v662_v30 = vpop.eup %661  ;;  %531 = vst [vmem:[#allocation3 + $0x38] sm:$0xff] %v515_v28  ;;  %v490_v37 = vmul.f32 %v851_v34, %v467_v36 }
 0x11c   :  { %v459_v40 = vadd.f32 1.0, %v662_v30  ;;  %v523_v31 = vadd.f32 %v863_v58, %v500_v19 }
 0x11d   :  { %v513_v41 = vadd.f32 %v863_v58, %v490_v37 }
 0x11e   :  { %v475_v42 = vmul.f32 %v459_v40, %v347_v33  ;;  %539 = vst [vmem:[#allocation3 + $0x78] sm:$0xff] %v523_v31 }
 0x11f   :  { %529 = vst [vmem:[#allocation3 + $0x28] sm:$0xff] %v513_v41 }
 0x120   :  { %v498_v47 = vmul.f32 %v851_v34, %v475_v42 }
 0x122   :  { %v521_v44 = vadd.f32 %v863_v58, %v498_v47 }
 0x124   :  { %537 = vst [vmem:[#allocation3 + $0x68] sm:$0xff] %v521_v44 }
 0x125   :  { %674 = shalt.err (!%p671_p4)
}
 0x126   :  { %s675_s21 = scalar_lea.hbm %s941_s5, 2048 }
 0x127   :  { %p676_p5 = scmp.ne.s32.totalorder %s941_s5, %s675_s21  ;;  %p679_p6 = scmp.lt.u32.totalorder %s675_s21, %s941_s5 }
 0x129   :  { %p681_p7 = pnand %p679_p6, %p676_p5 }
 0x12b   :  { %684 = shalt.err (!%p681_p7)
}
 0x12c   :  { %s688_s26 = smov 128   ;;  %s689_s27 = smov 8  }
 0x12d   :  { %551 = dma.vmem_to_hbm [thread:$0]  %s546_s17, 2048, %s941_s5, [#allocation4], %s688_s26, %s688_s26, %s689_s27  }
 0x12e   :  { %685 = dma.done.wait [#allocation4], 2048  }
 0x12f   :  { %686 = vsyncadd [#allocation4], 4294965248 }
 0x130   :  { %555 = vsyncpa [#allocation4], 1 }

</bundles_post_ra>
